<compile_context>
chip_gen: v7x
topology: tpu7x:2x2x1
jax: 0.10.0
libtpu: 0.0.40
codegen_flags: <defaults>
</compile_context>

<pallas_src>
import math
import functools

import jax
import jax.numpy as jnp
from jax.experimental import pallas as pl
from jax.experimental.pallas import tpu as pltpu

LANE = 128     # TPU lane width  (last dim)
SUBLANE = 8    # TPU sublane width (second-to-last dim)


def _round_up(n, m):
    return ((n + m - 1) // m) * m


def _pad2d(a, rows, cols):
    return jnp.pad(a, ((0, rows - a.shape[0]), (0, cols - a.shape[1])))


# ---------------------------------------------------------------------------
# Kernel
# ---------------------------------------------------------------------------
def _policy_kernel(n_hidden, sample, *refs):
    # refs layout:
    #   x, (w_i, b_i) * n_hidden, w_mean, b_mean,
    #   [log_std, noise]            (only when sample)
    #   mean_out, [out]             (out only when sample)
    x_ref = refs[0]
    idx = 1

    h = x_ref[...]                      # (TB, F_pad) in compute dtype
    compute_dtype = h.dtype

    # Hidden Linear + ReLU layers (unrolled at trace time).
    for _ in range(n_hidden):
        w_ref, b_ref = refs[idx], refs[idx + 1]
        idx += 2
        acc = jnp.dot(h, w_ref[...], preferred_element_type=jnp.float32)
        acc = jnp.maximum(acc + b_ref[...], 0.0)          # bias + ReLU in f32
        h = acc.astype(compute_dtype)

    # Mean head.
    wm_ref, bm_ref = refs[idx], refs[idx + 1]
    idx += 2
    mean = jnp.dot(h, wm_ref[...], preferred_element_type=jnp.float32) + bm_ref[...]

    if sample:
        logstd_ref, noise_ref = refs[idx], refs[idx + 1]
        idx += 2
        mean_ref, out_ref = refs[idx], refs[idx + 1]
        mean_ref[...] = mean.astype(mean_ref.dtype)
        # output = mean + randn * exp(log_std); exp lands on the EUP slot.
        out_ref[...] = (mean + noise_ref[...] * jnp.exp(logstd_ref[...])
                        ).astype(out_ref.dtype)
    else:
        mean_ref = refs[idx]
        mean_ref[...] = mean.astype(mean_ref.dtype)


# ---------------------------------------------------------------------------
# Wrapper
# ---------------------------------------------------------------------------
def gaussian_policy_forward(x, params, noise=None, deterministic=False,
                            compute_dtype=jnp.float32, batch_tile=512):
    """params: dict with 'hidden' = [(W, b), ...], 'mean' = (Wm, bm), 'log_std'.

    Returns (mean, output) with output == mean when deterministic.
    """
    hidden = params["hidden"]
    w_mean, b_mean = params["mean"]
    log_std = params["log_std"]

    batch, num_features = x.shape
    action_dim = w_mean.shape[1]
    n_hidden = len(hidden)
    sample = not deterministic
    if sample and noise is None:
        raise ValueError("noise must be provided when deterministic=False")

    # Lane-padded sizes (multiples of 128).
    sizes = [num_features] + [w.shape[1] for (w, _) in hidden]
    sizes_pad = [_round_up(s, LANE) for s in sizes]
    a_pad = _round_up(action_dim, LANE)

    # Batch tile (multiple of 8), grid over padded batch.
    tb = min(batch_tile, _round_up(batch, SUBLANE))
    tb = _round_up(tb, SUBLANE)
    batch_pad = _round_up(batch, tb)
    grid = (batch_pad // tb,)

    # ---- build padded inputs -------------------------------------------------
    inputs = []
    in_specs = []

    x_p = _pad2d(x.astype(compute_dtype), batch_pad, sizes_pad[0])
    inputs.append(x_p)
    in_specs.append(pl.BlockSpec((tb, sizes_pad[0]), lambda i: (i, 0)))

    const_map = lambda i: (0, 0)   # weights/biases stay resident across steps

    for li, (w, b) in enumerate(hidden):
        w_p = _pad2d(w.astype(compute_dtype), sizes_pad[li], sizes_pad[li + 1])
        b_p = _pad2d(b.reshape(1, -1).astype(jnp.float32), 1, sizes_pad[li + 1])
        inputs += [w_p, b_p]
        in_specs += [pl.BlockSpec(w_p.shape, const_map),
                     pl.BlockSpec(b_p.shape, const_map)]

    wm_p = _pad2d(w_mean.astype(compute_dtype), sizes_pad[-1], a_pad)
    bm_p = _pad2d(b_mean.reshape(1, -1).astype(jnp.float32), 1, a_pad)
    inputs += [wm_p, bm_p]
    in_specs += [pl.BlockSpec(wm_p.shape, const_map),
                 pl.BlockSpec(bm_p.shape, const_map)]

    if sample:
        ls_p = _pad2d(log_std.reshape(1, -1).astype(jnp.float32), 1, a_pad)
        noise_p = _pad2d(noise.astype(jnp.float32), batch_pad, a_pad)
        inputs += [ls_p, noise_p]
        in_specs += [pl.BlockSpec(ls_p.shape, const_map),
                     pl.BlockSpec((tb, a_pad), lambda i: (i, 0))]

    out_block = pl.BlockSpec((tb, a_pad), lambda i: (i, 0))
    if sample:
        out_shape = (jax.ShapeDtypeStruct((batch_pad, a_pad), jnp.float32),
                     jax.ShapeDtypeStruct((batch_pad, a_pad), jnp.float32))
        out_specs = (out_block, out_block)
    else:
        out_shape = jax.ShapeDtypeStruct((batch_pad, a_pad), jnp.float32)
        out_specs = out_block

    # ---- VMEM budget: resident weights + double-buffered activation tiles ----
    def _nbytes(a):
        return a.size * a.dtype.itemsize
    weight_bytes = sum(_nbytes(a) for a in inputs[1:])          # resident params
    tile_bytes = tb * sizes_pad[0] * jnp.dtype(compute_dtype).itemsize
    tile_bytes += (2 + int(sample)) * tb * a_pad * 4            # mean/out/noise
    vmem_limit = int(min(max(weight_bytes + 2 * tile_bytes + (4 << 20),
                             16 << 20), 64 << 20))

    kernel = functools.partial(_policy_kernel, n_hidden, sample)

    result = pl.pallas_call(
        kernel,
        grid=grid,
        in_specs=in_specs,
        out_specs=out_specs,
        out_shape=out_shape,
        compiler_params=pltpu.CompilerParams(
            dimension_semantics=("parallel",),        # v7x: shard batch on 2 TCs
            vmem_limit_bytes=vmem_limit,
        ),
    )(*inputs)

    if sample:
        mean_p, out_p = result
        mean = mean_p[:batch, :action_dim]
        out = out_p[:batch, :action_dim]
        return mean, out
    mean = result[:batch, :action_dim]
    return mean, mean


# ---------------------------------------------------------------------------
# Init (matches PyTorch module: xavier_uniform_ weights, default Linear bias)
# ---------------------------------------------------------------------------
def xavier_uniform(key, fan_in, fan_out, dtype=jnp.float32):
    bound = math.sqrt(6.0 / (fan_in + fan_out))
    # PyTorch weight is (out, in); we store the (in, out) transpose directly.
    return jax.random.uniform(key, (fan_in, fan_out), dtype, -bound, bound)


def default_linear_bias(key, fan_in, fan_out, dtype=jnp.float32):
    bound = 1.0 / math.sqrt(fan_in)
    return jax.random.uniform(key, (fan_out,), dtype, -bound, bound)


def init_gaussian_policy(key, hidden_sizes, num_features, action_dim,
                         log_std_init=-0.5):
    params = {"hidden": []}
    sizes = [num_features] + list(hidden_sizes)
    for i in range(len(hidden_sizes)):
        key, kw, kb = jax.random.split(key, 3)
        w = xavier_uniform(kw, sizes[i], sizes[i + 1])
        b = default_linear_bias(kb, sizes[i], sizes[i + 1])
        params["hidden"].append((w, b))
    key, kw, kb = jax.random.split(key, 3)
    params["mean"] = (
        xavier_uniform(kw, sizes[-1], action_dim),
        default_linear_bias(kb, sizes[-1], action_dim),
    )
    params["log_std"] = jnp.full((action_dim,), log_std_init, dtype=jnp.float32)
    return params


# ---------------------------------------------------------------------------
# Pure-JAX reference
# ---------------------------------------------------------------------------
def reference_forward(x, params, noise, compute_dtype=jnp.float32):
    h = x.astype(compute_dtype)
    for (w, b) in params["hidden"]:
        a = jnp.dot(h, w.astype(compute_dtype),
                    preferred_element_type=jnp.float32)
        h = jnp.maximum(a + b, 0.0).astype(compute_dtype)
    w_mean, b_mean = params["mean"]
    mean = jnp.dot(h, w_mean.astype(compute_dtype),
                   preferred_element_type=jnp.float32) + b_mean
    out = mean + noise * jnp.exp(params["log_std"])
    return mean, out


if __name__ == "__main__":
    key = jax.random.PRNGKey(0)

    batch = 8
    num_features = 32
    hidden_sizes = (32, 32)
    action_dim = 8

    key, k_params, k_x, k_noise = jax.random.split(key, 4)
    params = init_gaussian_policy(k_params, hidden_sizes, num_features, action_dim)
    x = jax.random.normal(k_x, (batch, num_features), dtype=jnp.float32)
    # torch.randn(mean.size()) equivalent, drawn in plain JAX for determinism.
    noise = jax.random.normal(k_noise, (batch, action_dim), dtype=jnp.float32)

    # --- f32, stochastic ---
    mean, out = gaussian_policy_forward(x, params, noise, deterministic=False)
    mean = jax.block_until_ready(mean)
    out = jax.block_until_ready(out)
    mean_ref, out_ref = reference_forward(x, params, noise)
    assert jnp.allclose(mean, mean_ref, atol=1e-5, rtol=1e-5)
    assert jnp.allclose(out, out_ref, atol=1e-5, rtol=1e-5)

    # --- f32, deterministic (no noise/log_std DMA, single output) ---
    mean_d, out_d = gaussian_policy_forward(x, params, deterministic=True)
    mean_d = jax.block_until_ready(mean_d)
    assert jnp.allclose(mean_d, mean_ref, atol=1e-5, rtol=1e-5)
    assert jnp.allclose(out_d, mean_ref, atol=1e-5, rtol=1e-5)

    # --- multi-step batch grid with ragged batch (exercises padding path) ---
    key, k_x2, k_n2 = jax.random.split(key, 3)
    x2 = jax.random.normal(k_x2, (300, num_features), dtype=jnp.float32)
    noise2 = jax.random.normal(k_n2, (300, action_dim), dtype=jnp.float32)
    mean2, out2 = gaussian_policy_forward(x2, params, noise2, batch_tile=128)
    mean2 = jax.block_until_ready(mean2)
    out2 = jax.block_until_ready(out2)
    mean2_ref, out2_ref = reference_forward(x2, params, noise2)
    assert jnp.allclose(mean2, mean2_ref, atol=1e-5, rtol=1e-5)
    assert jnp.allclose(out2, out2_ref, atol=1e-5, rtol=1e-5)

    # --- bf16 weights/activations, f32 accumulation (loose tolerance) ---
    mean_bf, out_bf = gaussian_policy_forward(
        x, params, noise, compute_dtype=jnp.bfloat16)
    mean_bf = jax.block_until_ready(mean_bf)
    out_bf = jax.block_until_ready(out_bf)
    mean_bf_ref, out_bf_ref = reference_forward(
        x, params, noise, compute_dtype=jnp.bfloat16)
    assert jnp.allclose(mean_bf, mean_bf_ref, atol=5e-2, rtol=5e-2)
    assert jnp.allclose(out_bf, out_bf_ref, atol=5e-2, rtol=5e-2)

    print("KERNEL_OK")
</pallas_src>

<mosaic_0001>
module attributes {stable_mosaic.version = 11 : i64} {
  func.func @_policy_kernel(%arg0: i32, %arg1: memref<8x128xf32, #tpu.memory_space<vmem>>, %arg2: memref<128x128xf32, #tpu.memory_space<vmem>>, %arg3: memref<1x128xf32, #tpu.memory_space<vmem>>, %arg4: memref<128x128xf32, #tpu.memory_space<vmem>>, %arg5: memref<1x128xf32, #tpu.memory_space<vmem>>, %arg6: memref<128x128xf32, #tpu.memory_space<vmem>>, %arg7: memref<1x128xf32, #tpu.memory_space<vmem>>, %arg8: memref<1x128xf32, #tpu.memory_space<vmem>>, %arg9: memref<8x128xf32, #tpu.memory_space<vmem>>, %arg10: memref<8x128xf32, #tpu.memory_space<vmem>>, %arg11: memref<8x128xf32, #tpu.memory_space<vmem>>) attributes {dimension_semantics = [#tpu.dimension_semantics<parallel>], iteration_bounds = array<i64: 1>, scalar_prefetch = 0 : i64, scratch_operands = 0 : i64, tpu.core_type = #tpu.core_type<tc>, window_params = [{transform_indices = @transform_0, window_bounds = array<i64: 8, 128>}, {pipeline_mode = #tpu.pipeline_mode<synchronous>, transform_indices = @transform_1, window_bounds = array<i64: 128, 128>}, {pipeline_mode = #tpu.pipeline_mode<synchronous>, transform_indices = @transform_2, window_bounds = array<i64: 1, 128>}, {pipeline_mode = #tpu.pipeline_mode<synchronous>, transform_indices = @transform_3, window_bounds = array<i64: 128, 128>}, {pipeline_mode = #tpu.pipeline_mode<synchronous>, transform_indices = @transform_4, window_bounds = array<i64: 1, 128>}, {pipeline_mode = #tpu.pipeline_mode<synchronous>, transform_indices = @transform_5, window_bounds = array<i64: 128, 128>}, {pipeline_mode = #tpu.pipeline_mode<synchronous>, transform_indices = @transform_6, window_bounds = array<i64: 1, 128>}, {pipeline_mode = #tpu.pipeline_mode<synchronous>, transform_indices = @transform_7, window_bounds = array<i64: 1, 128>}, {transform_indices = @transform_8, window_bounds = array<i64: 8, 128>}, {transform_indices = @transform_9, window_bounds = array<i64: 8, 128>}, {transform_indices = @transform_10, window_bounds = array<i64: 8, 128>}]} {
    %c0 = arith.constant 0 : index
    %c0_0 = arith.constant 0 : index
    %0 = vector.load %arg1[%c0, %c0_0] : memref<8x128xf32, #tpu.memory_space<vmem>>, vector<8x128xf32>
    %c0_1 = arith.constant 0 : index
    %c0_2 = arith.constant 0 : index
    %1 = vector.load %arg2[%c0_1, %c0_2] : memref<128x128xf32, #tpu.memory_space<vmem>>, vector<128x128xf32>
    %cst = arith.constant dense<0.000000e+00> : vector<8x128xf32>
    %2 = tpu.matmul %0, %1, %cst {dimension_numbers = #tpu.dot_dimension_numbers<[1], [0], [0], [1], [0, 0, 1, 1], [], []>} : vector<8x128xf32>, vector<128x128xf32>, vector<8x128xf32> -> vector<8x128xf32>
    %c0_3 = arith.constant 0 : index
    %c0_4 = arith.constant 0 : index
    %3 = vector.load %arg3[%c0_3, %c0_4] : memref<1x128xf32, #tpu.memory_space<vmem>>, vector<1x128xf32>
    %4 = vector.broadcast %3 : vector<1x128xf32> to vector<8x128xf32>
    %5 = arith.addf %2, %4 : vector<8x128xf32>
    %cst_5 = arith.constant 0.000000e+00 : f32
    %6 = vector.broadcast %cst_5 : f32 to vector<8x128xf32>
    %7 = arith.maximumf %5, %6 : vector<8x128xf32>
    %c0_6 = arith.constant 0 : index
    %c0_7 = arith.constant 0 : index
    %8 = vector.load %arg4[%c0_6, %c0_7] : memref<128x128xf32, #tpu.memory_space<vmem>>, vector<128x128xf32>
    %cst_8 = arith.constant dense<0.000000e+00> : vector<8x128xf32>
    %9 = tpu.matmul %7, %8, %cst_8 {dimension_numbers = #tpu.dot_dimension_numbers<[1], [0], [0], [1], [0, 0, 1, 1], [], []>} : vector<8x128xf32>, vector<128x128xf32>, vector<8x128xf32> -> vector<8x128xf32>
    %c0_9 = arith.constant 0 : index
    %c0_10 = arith.constant 0 : index
    %10 = vector.load %arg5[%c0_9, %c0_10] : memref<1x128xf32, #tpu.memory_space<vmem>>, vector<1x128xf32>
    %11 = vector.broadcast %10 : vector<1x128xf32> to vector<8x128xf32>
    %12 = arith.addf %9, %11 : vector<8x128xf32>
    %cst_11 = arith.constant 0.000000e+00 : f32
    %13 = vector.broadcast %cst_11 : f32 to vector<8x128xf32>
    %14 = arith.maximumf %12, %13 : vector<8x128xf32>
    %c0_12 = arith.constant 0 : index
    %c0_13 = arith.constant 0 : index
    %15 = vector.load %arg6[%c0_12, %c0_13] : memref<128x128xf32, #tpu.memory_space<vmem>>, vector<128x128xf32>
    %cst_14 = arith.constant dense<0.000000e+00> : vector<8x128xf32>
    %16 = tpu.matmul %14, %15, %cst_14 {dimension_numbers = #tpu.dot_dimension_numbers<[1], [0], [0], [1], [0, 0, 1, 1], [], []>} : vector<8x128xf32>, vector<128x128xf32>, vector<8x128xf32> -> vector<8x128xf32>
    %c0_15 = arith.constant 0 : index
    %c0_16 = arith.constant 0 : index
    %17 = vector.load %arg7[%c0_15, %c0_16] : memref<1x128xf32, #tpu.memory_space<vmem>>, vector<1x128xf32>
    %18 = vector.broadcast %17 : vector<1x128xf32> to vector<8x128xf32>
    %19 = arith.addf %16, %18 : vector<8x128xf32>
    %c0_17 = arith.constant 0 : index
    %c0_18 = arith.constant 0 : index
    %20 = vector.load %arg10[%c0_17, %c0_18] : memref<8x128xf32, #tpu.memory_space<vmem>>, vector<8x128xf32>
    tpu.vector_store %arg10[%c0_17, %c0_18], %19 {strides = array<i32>} : memref<8x128xf32, #tpu.memory_space<vmem>>, vector<8x128xf32>,
    %c0_19 = arith.constant 0 : index
    %c0_20 = arith.constant 0 : index
    %21 = vector.load %arg9[%c0_19, %c0_20] : memref<8x128xf32, #tpu.memory_space<vmem>>, vector<8x128xf32>
    %c0_21 = arith.constant 0 : index
    %c0_22 = arith.constant 0 : index
    %22 = vector.load %arg8[%c0_21, %c0_22] : memref<1x128xf32, #tpu.memory_space<vmem>>, vector<1x128xf32>
    %23 = math.exp %22 : vector<1x128xf32>
    %24 = vector.broadcast %23 : vector<1x128xf32> to vector<8x128xf32>
    %25 = arith.mulf %21, %24 : vector<8x128xf32>
    %26 = arith.addf %19, %25 : vector<8x128xf32>
    %c0_23 = arith.constant 0 : index
    %c0_24 = arith.constant 0 : index
    %27 = vector.load %arg11[%c0_23, %c0_24] : memref<8x128xf32, #tpu.memory_space<vmem>>, vector<8x128xf32>
    tpu.vector_store %arg11[%c0_23, %c0_24], %26 {strides = array<i32>} : memref<8x128xf32, #tpu.memory_space<vmem>>, vector<8x128xf32>,
    return
  }
  func.func @transform_0(%arg0: i32) -> (i32, i32) {
    %c0_i32 = arith.constant 0 : i32
    %c0_i32_0 = arith.constant 0 : i32
    return %arg0, %c0_i32 : i32, i32
  }
  func.func @transform_1(%arg0: i32) -> (i32, i32) {
    %c0_i32 = arith.constant 0 : i32
    %c0_i32_0 = arith.constant 0 : i32
    %c0_i32_1 = arith.constant 0 : i32
    return %c0_i32, %c0_i32_0 : i32, i32
  }
  func.func @transform_2(%arg0: i32) -> (i32, i32) {
    %c0_i32 = arith.constant 0 : i32
    %c0_i32_0 = arith.constant 0 : i32
    %c0_i32_1 = arith.constant 0 : i32
    return %c0_i32, %c0_i32_0 : i32, i32
  }
  func.func @transform_3(%arg0: i32) -> (i32, i32) {
    %c0_i32 = arith.constant 0 : i32
    %c0_i32_0 = arith.constant 0 : i32
    %c0_i32_1 = arith.constant 0 : i32
    return %c0_i32, %c0_i32_0 : i32, i32
  }
  func.func @transform_4(%arg0: i32) -> (i32, i32) {
    %c0_i32 = arith.constant 0 : i32
    %c0_i32_0 = arith.constant 0 : i32
    %c0_i32_1 = arith.constant 0 : i32
    return %c0_i32, %c0_i32_0 : i32, i32
  }
  func.func @transform_5(%arg0: i32) -> (i32, i32) {
    %c0_i32 = arith.constant 0 : i32
    %c0_i32_0 = arith.constant 0 : i32
    %c0_i32_1 = arith.constant 0 : i32
    return %c0_i32, %c0_i32_0 : i32, i32
  }
  func.func @transform_6(%arg0: i32) -> (i32, i32) {
    %c0_i32 = arith.constant 0 : i32
    %c0_i32_0 = arith.constant 0 : i32
    %c0_i32_1 = arith.constant 0 : i32
    return %c0_i32, %c0_i32_0 : i32, i32
  }
  func.func @transform_7(%arg0: i32) -> (i32, i32) {
    %c0_i32 = arith.constant 0 : i32
    %c0_i32_0 = arith.constant 0 : i32
    %c0_i32_1 = arith.constant 0 : i32
    return %c0_i32, %c0_i32_0 : i32, i32
  }
  func.func @transform_8(%arg0: i32) -> (i32, i32) {
    %c0_i32 = arith.constant 0 : i32
    %c0_i32_0 = arith.constant 0 : i32
    return %arg0, %c0_i32 : i32, i32
  }
  func.func @transform_9(%arg0: i32) -> (i32, i32) {
    %c0_i32 = arith.constant 0 : i32
    %c0_i32_0 = arith.constant 0 : i32
    return %arg0, %c0_i32 : i32, i32
  }
  func.func @transform_10(%arg0: i32) -> (i32, i32) {
    %c0_i32 = arith.constant 0 : i32
    %c0_i32_0 = arith.constant 0 : i32
    return %arg0, %c0_i32 : i32, i32
  }
}

</mosaic_0001>

<bundles_post_ra>
// kernel: tpu_custom_call.1
= control target key start
LH: loop header
LB: loop body
LE: loop exit
PB: predicated region body
PF: predicated region fallthrough
CT: control target
= control target key end

     0   :  { %16 = vsyncpa [#allocation3], 0  ;;  %s994_s0 = inlined_call_operand.hbm [shape: f32[8,128], index: 0, kind: input, shape index: {}]   ;;  %s995_s1 = inlined_call_operand.hbm [shape: f32[128,128], index: 1, kind: input, shape index: {}]   ;;  %s996_s2 = inlined_call_operand.vmem [shape: f32[1,128], index: 2, kind: input, shape index: {}]   ;;  %s997_s3 = inlined_call_operand.hbm [shape: f32[128,128], index: 3, kind: input, shape index: {}]   ;;  %s998_s4 = inlined_call_operand.vmem [shape: f32[1,128], index: 4, kind: input, shape index: {}]   ;;  %s999_s5 = inlined_call_operand.hbm [shape: f32[128,128], index: 5, kind: input, shape index: {}]   ;;  %s1000_s6 = inlined_call_operand.vmem [shape: f32[1,128], index: 6, kind: input, shape index: {}]   ;;  %s1001_s7 = inlined_call_operand.vmem [shape: f32[1,128], index: 7, kind: input, shape index: {}]   ;;  %s1002_s8 = inlined_call_operand.vmem [shape: f32[8,128], index: 8, kind: input, shape index: {}]   ;;  %s1003_s9 = inlined_call_operand.hbm [shape: f32[8,128], index: 9, kind: output, shape index: {0}]   ;;  %s1004_s10 = inlined_call_operand.hbm [shape: f32[8,128], index: 10, kind: output, shape index: {1}]  }
   0x1   :  { %17 = vsyncpa [#allocation6], 0 }
   0x2   :  { %18 = vsyncpa [#allocation9], 0 }
   0x3   :  { %19 = vsyncpa [#allocation4], 0 }
   0x4   :  { %20 = vsyncpa [#allocation12], 0  ;;  %s802_s13 = smov [#allocation5]   ;;  %s660_s17 = scalar_lea.hbm %s995_s1, 2048 }
   0x5   :  { %s36_s14 = sshll.u32 %s802_s13, 4  ;;  %p661_p0 = scmp.ne.s32.totalorder %s995_s1, %s660_s17  ;;  %s37_s14 = int_to_ptr.vmem [resolvable:$true] %s36_s14 }
   0x6   :  { %p664_p1 = scmp.lt.u32.totalorder %s660_s17, %s995_s1 }
   0x8   :  { %p666_p2 = pnand %p664_p1, %p661_p0 }
   0xa   :  { %669 = shalt.err (!%p666_p2)
}
   0xb   :  { %s670_s22 = scalar_lea.vmem %s37_s14, 2048  ;;  %p675_p4 = scmp.lt.s32.totalorder %s37_s14, %s37_s14 }
   0xc   :  { %p671_p3 = scmp.ne.s32.totalorder %s37_s14, %s670_s22  ;;  %p676_p5 = scmp.lt.s32.totalorder %s670_s22, %s670_s22 }
   0xe   :  { %p677_p6 = por %p676_p5, %p675_p4 }
  0x10   :  { %p678_p7 = pnand %p677_p6, %p671_p3 }
  0x12   :  { %681 = shalt.err (!%p678_p7)
}
  0x13   :  { %s803_s23 = smov 128   ;;  %s804_s24 = smov 8  }
  0x14   :  { %42 = dma.hbm_to_vmem [thread:$0]  %s995_s1, 2048, %s37_s14, [#allocation6], %s803_s23, %s803_s23, %s804_s24  }
  0x15   :  { %s805_s27 = smov [#allocation2]   ;;  %s806_s29 = smov [#allocation7]  }
  0x16   :  { %s27_s28 = sshll.u32 %s805_s27, 4  ;;  %s50_s30 = sshll.u32 %s806_s29, 4  ;;  %s28_s28 = int_to_ptr.vmem [resolvable:$true] %s27_s28  ;;  %s51_s30 = int_to_ptr.vmem [resolvable:$true] %s50_s30 }
  0x17   :  { %s682_s13 = scalar_lea.hbm %s994_s0, 128 }
  0x18   :  { %p683_p8 = scmp.ne.s32.totalorder %s994_s0, %s682_s13  ;;  %p686_p9 = scmp.lt.u32.totalorder %s682_s13, %s994_s0 }
  0x1a   :  { %p688_p10 = pnand %p686_p9, %p683_p8 }
  0x1c   :  { %691 = shalt.err (!%p688_p10)
}
  0x1d   :  { %s692_s1 = scalar_lea.vmem %s28_s28, 128  ;;  %p697_p12 = scmp.lt.s32.totalorder %s28_s28, %s28_s28 }
  0x1e   :  { %p693_p11 = scmp.ne.s32.totalorder %s28_s28, %s692_s1  ;;  %p698_p13 = scmp.lt.s32.totalorder %s692_s1, %s692_s1 }
  0x20   :  { %p699_p0 = por %p698_p13, %p697_p12 }
  0x22   :  { %p700_p1 = pnand %p699_p0, %p693_p11 }
  0x24   :  { %703 = shalt.err (!%p700_p1)
}
  0x25   :  { %30 = dma.hbm_to_vmem [thread:$0]  %s994_s0, 128, %s28_s28, [#allocation3]  }
  0x26   :  { %s704_s22 = scalar_lea.hbm %s997_s3, 2048 }
  0x27   :  { %p705_p2 = scmp.ne.s32.totalorder %s997_s3, %s704_s22  ;;  %p708_p3 = scmp.lt.u32.totalorder %s704_s22, %s997_s3 }
  0x29   :  { %p710_p4 = pnand %p708_p3, %p705_p2 }
  0x2b   :  { %713 = shalt.err (!%p710_p4)
}
  0x2c   :  { %s714_s11 = scalar_lea.vmem %s51_s30, 2048  ;;  %p719_p6 = scmp.lt.s32.totalorder %s51_s30, %s51_s30 }
  0x2d   :  { %p715_p5 = scmp.ne.s32.totalorder %s51_s30, %s714_s11  ;;  %p720_p7 = scmp.lt.s32.totalorder %s714_s11, %s714_s11 }
  0x2f   :  { %p721_p8 = por %p720_p7, %p719_p6 }
  0x31   :  { %p722_p9 = pnand %p721_p8, %p715_p5 }
  0x33   :  { %725 = shalt.err (!%p722_p9)
}
  0x34   :  { %56 = dma.hbm_to_vmem [thread:$0]  %s997_s3, 2048, %s51_s30, [#allocation6], %s803_s23, %s803_s23, %s804_s24  }
  0x35   :  { %s807_s12 = smov [#allocation8]   ;;  %s726_s17 = scalar_lea.hbm %s999_s5, 2048 }
  0x36   :  { %s64_s13 = sshll.u32 %s807_s12, 4  ;;  %p727_p10 = scmp.ne.s32.totalorder %s999_s5, %s726_s17  ;;  %s65_s13 = int_to_ptr.vmem [resolvable:$true] %s64_s13 }
  0x37   :  { %p730_p11 = scmp.lt.u32.totalorder %s726_s17, %s999_s5 }
  0x39   :  { %p732_p12 = pnand %p730_p11, %p727_p10 }
  0x3b   :  { %735 = shalt.err (!%p732_p12)
}
  0x3c   :  { %s736_s20 = scalar_lea.vmem %s65_s13, 2048  ;;  %p741_p0 = scmp.lt.s32.totalorder %s65_s13, %s65_s13 }
  0x3d   :  { %p737_p13 = scmp.ne.s32.totalorder %s65_s13, %s736_s20  ;;  %p742_p1 = scmp.lt.s32.totalorder %s736_s20, %s736_s20 }
  0x3f   :  { %p743_p2 = por %p742_p1, %p741_p0 }
  0x41   :  { %p744_p3 = pnand %p743_p2, %p737_p13 }
  0x43   :  { %747 = shalt.err (!%p744_p3)
}
  0x44   :  { %70 = dma.hbm_to_vmem [thread:$0]  %s999_s5, 2048, %s65_s13, [#allocation9], %s803_s23, %s803_s23, %s804_s24  }
  0x45   :  { %792 = dma.done.wait [#allocation3], 128  }
  0x46   :  { %793 = vsyncadd [#allocation3], 4294967168 }
  0x47   :  { %794 = dma.done.wait [#allocation6], 4096  }
  0x48   :  { %795 = vsyncadd [#allocation6], 4294963200 }
  0x49   :  { %796 = dma.done.wait [#allocation9], 2048  }
  0x4a   :  { %797 = vsyncadd [#allocation9], 4294965248  ;;  %v808_v0 = vmov 0.0|0.0   ;;  %vm809_vm0 = vmmov 0   ;;  %v810_v1 = vmov 0.0   ;;  %v90_v2 = vld [vmem:[#allocation5] sm:$0xff] }
  0x4b   :  { %575 = vmatprep.subr.bf16.mxu0 %v808_v0  ;;  %502 = vmatprep.mubr.msk.f32.mxu0 %vm809_vm0, %v810_v1  ;;  %v91_v3 = vld [vmem:[#allocation5 + $0x8] sm:$0xff]  ;;  %v92_v4 = vld [vmem:[#allocation5 + $0x10] sm:$0xff]  ;;  %v93_v6 = vld [vmem:[#allocation5 + $0x18] sm:$0xff]  ;;  %s811_s29 = smov [#allocation10]  }
  0x4c   :  { %599 = vmatprep.subr.bf16.mxu1 %v808_v0  ;;  %537 = vmatprep.mubr.msk.f32.mxu1 %vm809_vm0, %v810_v1  ;;  %v576_v5 = vpack.c.bf16 %v91_v3, %v90_v2  ;;  %v579_v7 = vpack.c.bf16 %v93_v6, %v92_v4  ;;  %v94_v8 = vld [vmem:[#allocation5 + $0x20] sm:$0xff]  ;;  %v95_v9 = vld [vmem:[#allocation5 + $0x28] sm:$0xff]  ;;  %v186_v12 = vld [vmem:[#allocation7 + $0x10] sm:$0xff]  ;;  %s391_s11 = sshll.u32 %s811_s29, 4  ;;  %s392_s11 = int_to_ptr.vmem [resolvable:$true] %s391_s11 }
  0x4d   :  { %v184_v10 = vld [vmem:[#allocation7] sm:$0xff]  ;;  %v185_v11 = vld [vmem:[#allocation7 + $0x8] sm:$0xff]  ;;  %v187_v13 = vld [vmem:[#allocation7 + $0x18] sm:$0xff]  ;;  %v582_v14 = vpack.c.bf16 %v95_v9, %v94_v8  ;;  %s748_s28 = scalar_lea.vmem %s392_s11, 128  ;;  %p753_p5 = scmp.lt.s32.totalorder %s392_s11, %s392_s11 }
  0x4e   :  { %577 = vmatpush3.bf16.msra.mxu0 %v576_v5  ;;  %v600_v15 = vpack.c.bf16 %v185_v11, %v184_v10  ;;  %v96_v16 = vld [vmem:[#allocation5 + $0x30] sm:$0xff]  ;;  %v97_v17 = vld [vmem:[#allocation5 + $0x38] sm:$0xff]  ;;  %v603_v18 = vpack.c.bf16 %v187_v13, %v186_v12  ;;  %v188_v19 = vld [vmem:[#allocation7 + $0x20] sm:$0xff]  ;;  %p749_p4 = scmp.ne.s32.totalorder %s392_s11, %s748_s28  ;;  %p754_p6 = scmp.lt.s32.totalorder %s748_s28, %s748_s28 }
  0x4f   :  { %578 = vmatprep.subr.bf16.mxu0 %v808_v0  ;;  %v189_v20 = vld [vmem:[#allocation7 + $0x28] sm:$0xff]  ;;  %v585_v21 = vpack.c.bf16 %v97_v17, %v96_v16  ;;  %v98_v22 = vld [vmem:[#allocation5 + $0x40] sm:$0xff]  ;;  %v190_v25 = vld [vmem:[#allocation7 + $0x30] sm:$0xff] }
  0x50   :  { %601 = vmatpush3.bf16.msra.mxu1 %v600_v15  ;;  %v99_v23 = vld [vmem:[#allocation5 + $0x48] sm:$0xff]  ;;  %v606_v24 = vpack.c.bf16 %v189_v20, %v188_v19  ;;  %v191_v26 = vld [vmem:[#allocation7 + $0x38] sm:$0xff]  ;;  %v100_v28 = vld [vmem:[#allocation5 + $0x50] sm:$0xff]  ;;  %p755_p7 = por %p754_p6, %p753_p5 }
  0x51   :  { %602 = vmatprep.subr.bf16.mxu1 %v808_v0  ;;  %v588_v27 = vpack.c.bf16 %v99_v23, %v98_v22  ;;  %v101_v29 = vld [vmem:[#allocation5 + $0x58] sm:$0xff]  ;;  %v609_v30 = vpack.c.bf16 %v191_v26, %v190_v25  ;;  %v192_v31 = vld [vmem:[#allocation7 + $0x40] sm:$0xff]  ;;  %v193_v32 = vld [vmem:[#allocation7 + $0x48] sm:$0xff]  ;;  %v377_v23 = vlaneseq }
  0x52   :  { %580 = vmatpush3.bf16.msra.mxu0 %v579_v7  ;;  %v591_v33 = vpack.c.bf16 %v101_v29, %v100_v28  ;;  %v102_v34 = vld [vmem:[#allocation5 + $0x60] sm:$0xff]  ;;  %v103_v35 = vld [vmem:[#allocation5 + $0x68] sm:$0xff]  ;;  %v612_v36 = vpack.c.bf16 %v193_v32, %v192_v31  ;;  %v194_v37 = vld [vmem:[#allocation7 + $0x50] sm:$0xff]  ;;  %p756_p8 = pnand %p755_p7, %p749_p4 }
  0x53   :  { %581 = vmatprep.subr.bf16.mxu0 %v808_v0  ;;  %v195_v38 = vld [vmem:[#allocation7 + $0x58] sm:$0xff]  ;;  %v594_v39 = vpack.c.bf16 %v103_v35, %v102_v34  ;;  %v104_v40 = vld [vmem:[#allocation5 + $0x70] sm:$0xff]  ;;  %v196_v43 = vld [vmem:[#allocation7 + $0x60] sm:$0xff] }
  0x54   :  { %604 = vmatpush3.bf16.msra.mxu1 %v603_v18  ;;  %v105_v41 = vld [vmem:[#allocation5 + $0x78] sm:$0xff]  ;;  %v615_v42 = vpack.c.bf16 %v195_v38, %v194_v37  ;;  %v197_v44 = vld [vmem:[#allocation7 + $0x68] sm:$0xff]  ;;  %v198_v48 = vld [vmem:[#allocation7 + $0x70] sm:$0xff] }
  0x55   :  { %605 = vmatprep.subr.bf16.mxu1 %v808_v0  ;;  %v597_v45 = vpack.c.bf16 %v105_v41, %v104_v40  ;;  %v618_v46 = vpack.c.bf16 %v197_v44, %v196_v43  ;;  %v89_v47 = vld [vmem:[#allocation2] sm:$0xff]  ;;  %v278_v51 = vld [vmem:[#allocation8] sm:$0xff]  ;;  %v279_v52 = vld [vmem:[#allocation8 + $0x8] sm:$0xff] }
  0x56   :  { %583 = vmatpush3.bf16.msra.mxu0 %v582_v14  ;;  %v199_v49 = vld [vmem:[#allocation7 + $0x78] sm:$0xff]  ;;  %v280_v53 = vld [vmem:[#allocation8 + $0x10] sm:$0xff]  ;;  %v624_v54 = vpack.c.bf16 %v279_v52, %v278_v51  ;;  %v282_v57 = vld [vmem:[#allocation8 + $0x20] sm:$0xff] }
  0x57   :  { %584 = vmatprep.subr.bf16.mxu0 %v808_v0  ;;  %v621_v50 = vpack.c.bf16 %v199_v49, %v198_v48  ;;  %v281_v55 = vld [vmem:[#allocation8 + $0x18] sm:$0xff]  ;;  %v283_v58 = vld [vmem:[#allocation8 + $0x28] sm:$0xff]  ;;  %v284_v60 = vld [vmem:[#allocation8 + $0x30] sm:$0xff] }
  0x58   :  { %607 = vmatpush3.bf16.msra.mxu1 %v606_v24  ;;  %v627_v56 = vpack.c.bf16 %v281_v55, %v280_v53  ;;  %v630_v59 = vpack.c.bf16 %v283_v58, %v282_v57  ;;  %v285_v61 = vld [vmem:[#allocation8 + $0x38] sm:$0xff]  ;;  %v286_v63 = vld [vmem:[#allocation8 + $0x40] sm:$0xff]  ;;  %v288_v3 = vld [vmem:[#allocation8 + $0x50] sm:$0xff]  ;;  %v378_v24 = vshrl.u32 %v377_v23, 7 }
  0x59   :  { %608 = vmatprep.subr.bf16.mxu1 %v808_v0  ;;  %v633_v62 = vpack.c.bf16 %v285_v61, %v284_v60  ;;  %v289_v4 = vld [vmem:[#allocation8 + $0x58] sm:$0xff]  ;;  %v290_v6 = vld [vmem:[#allocation8 + $0x60] sm:$0xff]  ;;  %v291_v7 = vld [vmem:[#allocation8 + $0x68] sm:$0xff] }
  0x5a   :  { %586 = vmatpush3.bf16.msra.mxu0 %v585_v21  ;;  %v639_v5 = vpack.c.bf16 %v289_v4, %v288_v3  ;;  %v642_v8 = vpack.c.bf16 %v291_v7, %v290_v6  ;;  %v416_v9 = vld [vmem:[%s996_s2] ss:$0 sm:$0xff]  ;;  %v292_v14 = vld [vmem:[#allocation8 + $0x70] sm:$0xff]  ;;  %v379_v25 = vsub.s32 0, %v378_v24 }
  0x5b   :  { %587 = vmatprep.subr.bf16.mxu0 %v808_v0  ;;  %v293_v15 = vld [vmem:[#allocation8 + $0x78] sm:$0xff] }
  0x5c   :  { %610 = vmatpush3.bf16.msra.mxu1 %v609_v30  ;;  %v645_v16 = vpack.c.bf16 %v293_v15, %v292_v14  ;;  %v417_v17 = vld [vmem:[%s998_s4] ss:$0 sm:$0xff] }
  0x5d   :  { %611 = vmatprep.subr.bf16.mxu1 %v808_v0  ;;  %v373_v21 = vld [vmem:[%s1001_s7] sm:$0x1]  ;;  %s812_s7 = smov [#allocation11]  }
  0x5e   :  { %589 = vmatpush3.bf16.msra.mxu0 %v588_v27  ;;  %v374_v22 = vmul.f32 1.442695, %v373_v21  ;;  %v372_v28 = vld [vmem:[%s1002_s8] sm:$0xff]  ;;  %s401_s0 = sshll.u32 %s812_s7, 4  ;;  %s402_s0 = int_to_ptr.vmem [resolvable:$true] %s401_s0 }
  0x5f   :  { %590 = vmatprep.subr.bf16.mxu0 %v808_v0  ;;  %v418_v29 = vld [vmem:[%s1000_s6] ss:$0 sm:$0xff] }
  0x60   :  { %613 = vmatpush3.bf16.msra.mxu1 %v612_v36  ;;  %658 = vpow2.f32 %v374_v22 }
  0x61   :  { %614 = vmatprep.subr.bf16.mxu1 %v808_v0 }
  0x62   :  { %592 = vmatpush3.bf16.msra.mxu0 %v591_v33 }
  0x63   :  { %593 = vmatprep.subr.bf16.mxu0 %v808_v0 }
  0x64   :  { %616 = vmatpush3.bf16.msra.mxu1 %v615_v42 }
  0x65   :  { %617 = vmatprep.subr.bf16.mxu1 %v808_v0 }
  0x66   :  { %595 = vmatpush3.bf16.msra.mxu0 %v594_v39 }
  0x67   :  { %596 = vmatprep.subr.bf16.mxu0 %v808_v0 }
  0x68   :  { %619 = vmatpush3.bf16.msra.mxu1 %v618_v46 }
  0x69   :  { %620 = vmatprep.subr.bf16.mxu1 %v808_v0 }
  0x6a   :  { %598 = vmatpush3.bf16.msra.mxu0 %v597_v45  ;;  %v659_v26 = vpop.eup %658 }
  0x6b   :  { %623 = vmatprep.subr.bf16.mxu0 %v808_v0  ;;  %v380_v27 = vrot.slane %v659_v26, %v379_v25 }
  0x6c   :  { %622 = vmatpush3.bf16.msra.mxu1 %v621_v50 }
  0x6d   :  { %503 = vmatmul.mubr.f32.vlgmr.msra.gmra.mrb[0].mxu0 %v89_v47  ;;  %v382_v30 = vmul.f32 %v380_v27, %v372_v28 }
  0x6e   :  { %572 = vmatprep.mubr.msk.f32.mxu0 %vm809_vm0, %v810_v1  ;;  %625 = vmatpush3.bf16.msra.mxu0 %v624_v54  ;;  %v287_v1 = vld [vmem:[#allocation8 + $0x48] sm:$0xff] }
  0x6f   :  { %626 = vmatprep.subr.bf16.mxu0 %v808_v0  ;;  %v636_v2 = vpack.c.bf16 %v287_v1, %v286_v63 }
  0x72   :  { %628 = vmatpush3.bf16.msra.mxu0 %v627_v56 }
  0x73   :  { %629 = vmatprep.subr.bf16.mxu0 %v808_v0 }
  0x76   :  { %631 = vmatpush3.bf16.msra.mxu0 %v630_v59 }
  0x77   :  { %632 = vmatprep.subr.bf16.mxu0 %v808_v0 }
  0x7a   :  { %634 = vmatpush3.bf16.msra.mxu0 %v633_v62 }
  0x7b   :  { %635 = vmatprep.subr.bf16.mxu0 %v808_v0 }
  0x7e   :  { %637 = vmatpush3.bf16.msra.mxu0 %v636_v2 }
  0x7f   :  { %638 = vmatprep.subr.bf16.mxu0 %v808_v0 }
  0x82   :  { %640 = vmatpush3.bf16.msra.mxu0 %v639_v5 }
  0x83   :  { %641 = vmatprep.subr.bf16.mxu0 %v808_v0 }
  0x86   :  { %643 = vmatpush3.bf16.msra.mxu0 %v642_v8 }
  0x87   :  { %644 = vmatprep.subr.bf16.mxu0 %v808_v0 }
  0x8a   :  { %646 = vmatpush3.bf16.msra.mxu0 %v645_v16 }
 0x140   :  { %v179_v10 = vpop.f32.mrb[0].mxu0 }
 0x141   :  { %v180_v11 = vadd.f32 %v416_v9, %v179_v10  ;;  %v504_v12 = vpop.f32.mrb[1].mxu0 }
 0x143   :  { %v183_v13 = vmax.f32 %v180_v11, 0.0 }
 0x145   :  { %538 = vmatmul.mubr.f32.vlgmr.msra.gmra.mrb[0].mxu1 %v183_v13 }
 0x218   :  { %v273_v18 = vpop.f32.mrb[0].mxu1 }
 0x219   :  { %v274_v19 = vadd.f32 %v417_v17, %v273_v18  ;;  %v539_v0 = vpop.f32.mrb[1].mxu1 }
 0x21b   :  { %v277_v20 = vmax.f32 %v274_v19, 0.0 }
 0x21d   :  { %573 = vmatmul.mubr.f32.vlgmr.msra.gmra.mrb[2].mxu0 %v277_v20 }
 0x2f0   :  { %v367_v31 = vpop.f32.mrb[2].mxu0 }
 0x2f1   :  { %v368_v32 = vadd.f32 %v418_v29, %v367_v31  ;;  %v574_v33 = vpop.f32.mrb[3].mxu0 }
 0x2f3   :  { %v383_v34 = vadd.f32 %v382_v30, %v368_v32  ;;  %371 = vst [vmem:[#allocation10] sm:$0xff] %v368_v32 }
 0x2f4   :  { %759 = shalt.err (!%p756_p8)
}
 0x2f5   :  { %s760_s12 = scalar_lea.hbm %s1003_s9, 128 }
 0x2f6   :  { %p761_p9 = scmp.ne.s32.totalorder %s1003_s9, %s760_s12  ;;  %p764_p10 = scmp.lt.u32.totalorder %s760_s12, %s1003_s9 }
 0x2f8   :  { %p766_p11 = pnand %p764_p10, %p761_p9 }
 0x2fa   :  { %769 = shalt.err (!%p766_p11)
}
 0x2fb   :  { %394 = dma.vmem_to_hbm [thread:$0]  %s392_s11, 128, %s1003_s9, [#allocation4]   ;;  %384 = vst [vmem:[#allocation11] sm:$0xff] %v383_v34 }
 0x2fc   :  { %s770_s14 = scalar_lea.vmem %s402_s0, 128  ;;  %p775_p13 = scmp.lt.s32.totalorder %s402_s0, %s402_s0 }
 0x2fd   :  { %p771_p12 = scmp.ne.s32.totalorder %s402_s0, %s770_s14  ;;  %p776_p0 = scmp.lt.s32.totalorder %s770_s14, %s770_s14 }
 0x2ff   :  { %p777_p1 = por %p776_p0, %p775_p13 }
 0x301   :  { %p778_p2 = pnand %p777_p1, %p771_p12 }
 0x303   :  { %781 = shalt.err (!%p778_p2)
}
 0x304   :  { %s782_s3 = scalar_lea.hbm %s1004_s10, 128 }
 0x305   :  { %p783_p3 = scmp.ne.s32.totalorder %s1004_s10, %s782_s3  ;;  %p786_p4 = scmp.lt.u32.totalorder %s782_s3, %s1004_s10 }
 0x307   :  { %p788_p5 = pnand %p786_p4, %p783_p3 }
 0x309   :  { %791 = shalt.err (!%p788_p5)
}
 0x30a   :  { %404 = dma.vmem_to_hbm [thread:$0]  %s402_s0, 128, %s1004_s10, [#allocation12]  }
 0x30b   :  { %798 = dma.done.wait [#allocation4], 128  }
 0x30c   :  { %799 = vsyncadd [#allocation4], 4294967168 }
 0x30d   :  { %800 = dma.done.wait [#allocation12], 128  }
 0x30e   :  { %801 = vsyncadd [#allocation12], 4294967168 }
 0x30f   :  { %411 = vsyncpa [#allocation3], 1 }
 0x310   :  { %412 = vsyncpa [#allocation6], 1 }
 0x311   :  { %413 = vsyncpa [#allocation9], 1 }
 0x312   :  { %414 = vsyncpa [#allocation4], 1 }
 0x313   :  { %415 = vsyncpa [#allocation12], 1 }

</bundles_post_ra>
